<compile_context>
chip_gen: v7x
topology: tpu7x:2x2x1
jax: 0.10.0
libtpu: 0.0.40
codegen_flags: <defaults>
</compile_context>

<pallas_src>
import jax
import jax.numpy as jnp
from jax.experimental import pallas as pl
from jax.experimental.pallas import tpu as pltpu


# ---------------- small shapes consistent with the module ----------------
H = 128          # hidden width   (original: 1152)
IN = 2 * H       # input width    (original: 2304 = 2 * 1152)
B = 16           # batch          (original: 1; padded to a full bf16 sublane tile)


def _mlp_chain_kernel(x_ref, w1_ref, wc_ref, b_ref, out_ref):
    """9-layer Linear chain, all-resident in VMEM, 9 MXU dots, no concats.

    wc_ref column layout (units of H = 128 lanes):
      [0:1)   W2
      [1:4)   v2-fused:  [W3 | W4[0:H] | W9[0:H]]
      [4:6)   v3-fused:  [W4[H:2H]     | W9[1H:2H]]
      [6:8)   v4-fused:  [W5           | W9[2H:3H]]
      [8:10)  v5-fused:  [W6           | W9[3H:4H]]
      [10:12) v6-fused:  [W7           | W9[4H:5H]]
      [12:14) v7-fused:  [W8           | W9[5H:6H]]
      [14:15) v8-fused:  [W9[6H:7H]]
    """
    f32 = jnp.float32
    bf16 = jnp.bfloat16

    def dot(a16, w16):
        return jnp.dot(a16, w16, preferred_element_type=f32)

    # fc1: (B, 2H) @ (2H, H)  -- single K=256 reduction.
    v1 = (dot(x_ref[...], w1_ref[...]) + b_ref[0]).astype(bf16)

    # fc2: (B, H) @ (H, H)
    v2 = (dot(v1, wc_ref[:, 0:H]) + b_ref[1]).astype(bf16)

    # v2 fused dot -> [v3 pre | fc4 partial | fc9 partial]   (B, 3H)
    r2 = dot(v2, wc_ref[:, 1 * H:4 * H])
    v3 = (r2[:, 0:H] + b_ref[2]).astype(bf16)
    v4_acc = r2[:, H:2 * H]
    v9_acc = r2[:, 2 * H:3 * H] + b_ref[8]

    # v3 fused dot -> [fc4 partial | fc9 partial]            (B, 2H)
    r3 = dot(v3, wc_ref[:, 4 * H:6 * H])
    v4 = (v4_acc + r3[:, 0:H] + b_ref[3]).astype(bf16)
    v9_acc = v9_acc + r3[:, H:2 * H]

    # v4 fused dot -> [v5 pre | fc9 partial]
    r4 = dot(v4, wc_ref[:, 6 * H:8 * H])
    v5 = (r4[:, 0:H] + b_ref[4]).astype(bf16)
    v9_acc = v9_acc + r4[:, H:2 * H]

    # v5 fused dot -> [v6 pre | fc9 partial]
    r5 = dot(v5, wc_ref[:, 8 * H:10 * H])
    v6 = (r5[:, 0:H] + b_ref[5]).astype(bf16)
    v9_acc = v9_acc + r5[:, H:2 * H]

    # v6 fused dot -> [v7 pre | fc9 partial]
    r6 = dot(v6, wc_ref[:, 10 * H:12 * H])
    v7 = (r6[:, 0:H] + b_ref[6]).astype(bf16)
    v9_acc = v9_acc + r6[:, H:2 * H]

    # v7 fused dot -> [v8 pre | fc9 partial]
    r7 = dot(v7, wc_ref[:, 12 * H:14 * H])
    v8 = (r7[:, 0:H] + b_ref[7]).astype(bf16)
    v9_acc = v9_acc + r7[:, H:2 * H]

    # v8 final dot -> last fc9 partial
    v9 = v9_acc + dot(v8, wc_ref[:, 14 * H:15 * H])

    out_ref[...] = v9.astype(out_ref.dtype)


@jax.jit
def mlp_chain(x, params):
    """params: list of (W_transposed (in, out) f32, b (1, out) f32) for fc1..fc9."""
    bf16 = jnp.bfloat16

    W = [p[0] for p in params]
    bs = [p[1] for p in params]

    W4 = W[3]          # (2H, H)
    W9 = W[8]          # (7H, H)

    # fc1 weight kept separate so its K=256 reduction stays a single dot.
    w1 = W[0].astype(bf16)                                            # (2H, H)

    # One column-packed operand for everything that multiplies an (B, H) LHS.
    wc = jnp.concatenate(
        [
            W[1],                                                     # W2
            jnp.concatenate([W[2], W4[:H], W9[0 * H:1 * H]], axis=1),  # v2 fused
            jnp.concatenate([W4[H:], W9[1 * H:2 * H]], axis=1),        # v3 fused
            jnp.concatenate([W[4], W9[2 * H:3 * H]], axis=1),          # v4 fused
            jnp.concatenate([W[5], W9[3 * H:4 * H]], axis=1),          # v5 fused
            jnp.concatenate([W[6], W9[4 * H:5 * H]], axis=1),          # v6 fused
            jnp.concatenate([W[7], W9[5 * H:6 * H]], axis=1),          # v7 fused
            W9[6 * H:7 * H],                                           # v8 fused
        ],
        axis=1,
    ).astype(bf16)                                                    # (H, 15H)

    bsz = x.shape[0]
    # Pre-broadcast biases so the kernel adds (B, H) blocks directly.
    biases = jnp.stack([jnp.broadcast_to(b, (bsz, H)) for b in bs])   # (9, B, H) f32

    x16 = x.astype(bf16)

    vmem_spec = pl.BlockSpec(memory_space=pltpu.MemorySpace.VMEM)

    return pl.pallas_call(
        _mlp_chain_kernel,
        out_shape=jax.ShapeDtypeStruct((bsz, H), jnp.float32),
        in_specs=[vmem_spec] * 4,
        out_specs=vmem_spec,
        compiler_params=pltpu.CompilerParams(vmem_limit_bytes=8 << 20),
    )(x16, w1, wc, biases)


# --------------------------- parameter setup (glue) ---------------------------
def make_params(key):
    """Deterministic PyTorch-style init: U(-1/sqrt(fan_in), 1/sqrt(fan_in))."""
    dims = [
        (IN, H),        # fc1
        (H, H),         # fc2
        (H, H),         # fc3
        (2 * H, H),     # fc4  (takes cat([v2, v3]))
        (H, H),         # fc5
        (H, H),         # fc6
        (H, H),         # fc7
        (H, H),         # fc8
        (7 * H, H),     # fc9  (takes cat([v2..v8]))
    ]
    params = []
    for (fan_in, fan_out) in dims:
        key, kw, kb = jax.random.split(key, 3)
        bound = 1.0 / jnp.sqrt(jnp.float32(fan_in))
        # stored pre-transposed: (in, out)
        w = jax.random.uniform(kw, (fan_in, fan_out), jnp.float32, -bound, bound)
        b = jax.random.uniform(kb, (1, fan_out), jnp.float32, -bound, bound)
        params.append((w, b))
    return params


def reference(x, params):
    """Pure-JAX reference mirroring the kernel's bf16/f32 mixed precision."""
    bf16 = jnp.bfloat16

    def lin(a, p):
        return (jnp.dot(a.astype(bf16), p[0].astype(bf16),
                        preferred_element_type=jnp.float32) + p[1])

    v1 = lin(x, params[0])
    v2 = lin(v1, params[1])
    v3 = lin(v2, params[2])
    v4 = lin(jnp.concatenate([v2, v3], axis=1), params[3])
    v5 = lin(v4, params[4])
    v6 = lin(v5, params[5])
    v7 = lin(v6, params[6])
    v8 = lin(v7, params[7])
    v9 = lin(jnp.concatenate([v2, v3, v4, v5, v6, v7, v8], axis=1), params[8])
    return v9


if __name__ == "__main__":
    key = jax.random.PRNGKey(0)
    key, kx = jax.random.split(key)
    x = jax.random.normal(kx, (B, IN), jnp.float32)
    params = make_params(key)

    out = mlp_chain(x, params)
    out = jax.block_until_ready(out)

    ref = reference(x, params)
    assert out.shape == (B, H), out.shape
    # bf16 inputs with f32 accumulation; column-fused / split-K partial dots
    # only change f32 summation order -> small tolerance suffices.
    assert jnp.allclose(out, ref, atol=2e-2, rtol=2e-2), \
        float(jnp.max(jnp.abs(out - ref)))

    print("KERNEL_OK")
</pallas_src>

<mosaic_0001>
module attributes {stable_mosaic.version = 11 : i64} {
  func.func @_mlp_chain_kernel(%arg0: memref<16x256xbf16, #tpu.memory_space<vmem>>, %arg1: memref<256x128xbf16, #tpu.memory_space<vmem>>, %arg2: memref<128x1920xbf16, #tpu.memory_space<vmem>>, %arg3: memref<9x16x128xf32, #tpu.memory_space<vmem>>, %arg4: memref<16x128xf32, #tpu.memory_space<vmem>>) attributes {dimension_semantics = [], scalar_prefetch = 0 : i64, scratch_operands = 0 : i64, tpu.core_type = #tpu.core_type<tc>} {
    %c0 = arith.constant 0 : index
    %c0_0 = arith.constant 0 : index
    %0 = vector.load %arg0[%c0, %c0_0] : memref<16x256xbf16, #tpu.memory_space<vmem>>, vector<16x256xbf16>
    %c0_1 = arith.constant 0 : index
    %c0_2 = arith.constant 0 : index
    %1 = vector.load %arg1[%c0_1, %c0_2] : memref<256x128xbf16, #tpu.memory_space<vmem>>, vector<256x128xbf16>
    %cst = arith.constant dense<0.000000e+00> : vector<16x128xf32>
    %2 = tpu.matmul %0, %1, %cst {dimension_numbers = #tpu.dot_dimension_numbers<[1], [0], [0], [1], [0, 0, 1, 1], [], []>} : vector<16x256xbf16>, vector<256x128xbf16>, vector<16x128xf32> -> vector<16x128xf32>
    %c0_3 = arith.constant 0 : index
    %c0_4 = arith.constant 0 : index
    %c0_5 = arith.constant 0 : index
    %3 = vector.load %arg3[%c0_3, %c0_4, %c0_5] : memref<9x16x128xf32, #tpu.memory_space<vmem>>, vector<1x16x128xf32>
    %4 = vector.shape_cast %3 : vector<1x16x128xf32> to vector<16x128xf32>
    %5 = arith.addf %2, %4 : vector<16x128xf32>
    %6 = arith.truncf %5 : vector<16x128xf32> to vector<16x128xbf16>
    %c0_6 = arith.constant 0 : index
    %c0_7 = arith.constant 0 : index
    %7 = vector.load %arg2[%c0_6, %c0_7] : memref<128x1920xbf16, #tpu.memory_space<vmem>>, vector<128x128xbf16>
    %cst_8 = arith.constant dense<0.000000e+00> : vector<16x128xf32>
    %8 = tpu.matmul %6, %7, %cst_8 {dimension_numbers = #tpu.dot_dimension_numbers<[1], [0], [0], [1], [0, 0, 1, 1], [], []>} : vector<16x128xbf16>, vector<128x128xbf16>, vector<16x128xf32> -> vector<16x128xf32>
    %c1 = arith.constant 1 : index
    %c0_9 = arith.constant 0 : index
    %c0_10 = arith.constant 0 : index
    %9 = vector.load %arg3[%c1, %c0_9, %c0_10] : memref<9x16x128xf32, #tpu.memory_space<vmem>>, vector<1x16x128xf32>
    %10 = vector.shape_cast %9 : vector<1x16x128xf32> to vector<16x128xf32>
    %11 = arith.addf %8, %10 : vector<16x128xf32>
    %12 = arith.truncf %11 : vector<16x128xf32> to vector<16x128xbf16>
    %c0_11 = arith.constant 0 : index
    %c128 = arith.constant 128 : index
    %13 = vector.load %arg2[%c0_11, %c128] : memref<128x1920xbf16, #tpu.memory_space<vmem>>, vector<128x384xbf16>
    %cst_12 = arith.constant dense<0.000000e+00> : vector<16x384xf32>
    %14 = tpu.matmul %12, %13, %cst_12 {dimension_numbers = #tpu.dot_dimension_numbers<[1], [0], [0], [1], [0, 0, 1, 1], [], []>} : vector<16x128xbf16>, vector<128x384xbf16>, vector<16x384xf32> -> vector<16x384xf32>
    %15 = vector.extract_strided_slice %14 {offsets = [0, 0], sizes = [16, 128], strides = [1, 1]} : vector<16x384xf32> to vector<16x128xf32>
    %c2 = arith.constant 2 : index
    %c0_13 = arith.constant 0 : index
    %c0_14 = arith.constant 0 : index
    %16 = vector.load %arg3[%c2, %c0_13, %c0_14] : memref<9x16x128xf32, #tpu.memory_space<vmem>>, vector<1x16x128xf32>
    %17 = vector.shape_cast %16 : vector<1x16x128xf32> to vector<16x128xf32>
    %18 = arith.addf %15, %17 : vector<16x128xf32>
    %19 = arith.truncf %18 : vector<16x128xf32> to vector<16x128xbf16>
    %20 = vector.extract_strided_slice %14 {offsets = [0, 128], sizes = [16, 128], strides = [1, 1]} : vector<16x384xf32> to vector<16x128xf32>
    %21 = vector.extract_strided_slice %14 {offsets = [0, 256], sizes = [16, 128], strides = [1, 1]} : vector<16x384xf32> to vector<16x128xf32>
    %c8 = arith.constant 8 : index
    %c0_15 = arith.constant 0 : index
    %c0_16 = arith.constant 0 : index
    %22 = vector.load %arg3[%c8, %c0_15, %c0_16] : memref<9x16x128xf32, #tpu.memory_space<vmem>>, vector<1x16x128xf32>
    %23 = vector.shape_cast %22 : vector<1x16x128xf32> to vector<16x128xf32>
    %24 = arith.addf %21, %23 : vector<16x128xf32>
    %c0_17 = arith.constant 0 : index
    %c512 = arith.constant 512 : index
    %25 = vector.load %arg2[%c0_17, %c512] : memref<128x1920xbf16, #tpu.memory_space<vmem>>, vector<128x256xbf16>
    %cst_18 = arith.constant dense<0.000000e+00> : vector<16x256xf32>
    %26 = tpu.matmul %19, %25, %cst_18 {dimension_numbers = #tpu.dot_dimension_numbers<[1], [0], [0], [1], [0, 0, 1, 1], [], []>} : vector<16x128xbf16>, vector<128x256xbf16>, vector<16x256xf32> -> vector<16x256xf32>
    %27 = vector.extract_strided_slice %26 {offsets = [0, 0], sizes = [16, 128], strides = [1, 1]} : vector<16x256xf32> to vector<16x128xf32>
    %28 = arith.addf %20, %27 : vector<16x128xf32>
    %c3 = arith.constant 3 : index
    %c0_19 = arith.constant 0 : index
    %c0_20 = arith.constant 0 : index
    %29 = vector.load %arg3[%c3, %c0_19, %c0_20] : memref<9x16x128xf32, #tpu.memory_space<vmem>>, vector<1x16x128xf32>
    %30 = vector.shape_cast %29 : vector<1x16x128xf32> to vector<16x128xf32>
    %31 = arith.addf %28, %30 : vector<16x128xf32>
    %32 = arith.truncf %31 : vector<16x128xf32> to vector<16x128xbf16>
    %33 = vector.extract_strided_slice %26 {offsets = [0, 128], sizes = [16, 128], strides = [1, 1]} : vector<16x256xf32> to vector<16x128xf32>
    %34 = arith.addf %24, %33 : vector<16x128xf32>
    %c0_21 = arith.constant 0 : index
    %c768 = arith.constant 768 : index
    %35 = vector.load %arg2[%c0_21, %c768] : memref<128x1920xbf16, #tpu.memory_space<vmem>>, vector<128x256xbf16>
    %cst_22 = arith.constant dense<0.000000e+00> : vector<16x256xf32>
    %36 = tpu.matmul %32, %35, %cst_22 {dimension_numbers = #tpu.dot_dimension_numbers<[1], [0], [0], [1], [0, 0, 1, 1], [], []>} : vector<16x128xbf16>, vector<128x256xbf16>, vector<16x256xf32> -> vector<16x256xf32>
    %37 = vector.extract_strided_slice %36 {offsets = [0, 0], sizes = [16, 128], strides = [1, 1]} : vector<16x256xf32> to vector<16x128xf32>
    %c4 = arith.constant 4 : index
    %c0_23 = arith.constant 0 : index
    %c0_24 = arith.constant 0 : index
    %38 = vector.load %arg3[%c4, %c0_23, %c0_24] : memref<9x16x128xf32, #tpu.memory_space<vmem>>, vector<1x16x128xf32>
    %39 = vector.shape_cast %38 : vector<1x16x128xf32> to vector<16x128xf32>
    %40 = arith.addf %37, %39 : vector<16x128xf32>
    %41 = arith.truncf %40 : vector<16x128xf32> to vector<16x128xbf16>
    %42 = vector.extract_strided_slice %36 {offsets = [0, 128], sizes = [16, 128], strides = [1, 1]} : vector<16x256xf32> to vector<16x128xf32>
    %43 = arith.addf %34, %42 : vector<16x128xf32>
    %c0_25 = arith.constant 0 : index
    %c1024 = arith.constant 1024 : index
    %44 = vector.load %arg2[%c0_25, %c1024] : memref<128x1920xbf16, #tpu.memory_space<vmem>>, vector<128x256xbf16>
    %cst_26 = arith.constant dense<0.000000e+00> : vector<16x256xf32>
    %45 = tpu.matmul %41, %44, %cst_26 {dimension_numbers = #tpu.dot_dimension_numbers<[1], [0], [0], [1], [0, 0, 1, 1], [], []>} : vector<16x128xbf16>, vector<128x256xbf16>, vector<16x256xf32> -> vector<16x256xf32>
    %46 = vector.extract_strided_slice %45 {offsets = [0, 0], sizes = [16, 128], strides = [1, 1]} : vector<16x256xf32> to vector<16x128xf32>
    %c5 = arith.constant 5 : index
    %c0_27 = arith.constant 0 : index
    %c0_28 = arith.constant 0 : index
    %47 = vector.load %arg3[%c5, %c0_27, %c0_28] : memref<9x16x128xf32, #tpu.memory_space<vmem>>, vector<1x16x128xf32>
    %48 = vector.shape_cast %47 : vector<1x16x128xf32> to vector<16x128xf32>
    %49 = arith.addf %46, %48 : vector<16x128xf32>
    %50 = arith.truncf %49 : vector<16x128xf32> to vector<16x128xbf16>
    %51 = vector.extract_strided_slice %45 {offsets = [0, 128], sizes = [16, 128], strides = [1, 1]} : vector<16x256xf32> to vector<16x128xf32>
    %52 = arith.addf %43, %51 : vector<16x128xf32>
    %c0_29 = arith.constant 0 : index
    %c1280 = arith.constant 1280 : index
    %53 = vector.load %arg2[%c0_29, %c1280] : memref<128x1920xbf16, #tpu.memory_space<vmem>>, vector<128x256xbf16>
    %cst_30 = arith.constant dense<0.000000e+00> : vector<16x256xf32>
    %54 = tpu.matmul %50, %53, %cst_30 {dimension_numbers = #tpu.dot_dimension_numbers<[1], [0], [0], [1], [0, 0, 1, 1], [], []>} : vector<16x128xbf16>, vector<128x256xbf16>, vector<16x256xf32> -> vector<16x256xf32>
    %55 = vector.extract_strided_slice %54 {offsets = [0, 0], sizes = [16, 128], strides = [1, 1]} : vector<16x256xf32> to vector<16x128xf32>
    %c6 = arith.constant 6 : index
    %c0_31 = arith.constant 0 : index
    %c0_32 = arith.constant 0 : index
    %56 = vector.load %arg3[%c6, %c0_31, %c0_32] : memref<9x16x128xf32, #tpu.memory_space<vmem>>, vector<1x16x128xf32>
    %57 = vector.shape_cast %56 : vector<1x16x128xf32> to vector<16x128xf32>
    %58 = arith.addf %55, %57 : vector<16x128xf32>
    %59 = arith.truncf %58 : vector<16x128xf32> to vector<16x128xbf16>
    %60 = vector.extract_strided_slice %54 {offsets = [0, 128], sizes = [16, 128], strides = [1, 1]} : vector<16x256xf32> to vector<16x128xf32>
    %61 = arith.addf %52, %60 : vector<16x128xf32>
    %c0_33 = arith.constant 0 : index
    %c1536 = arith.constant 1536 : index
    %62 = vector.load %arg2[%c0_33, %c1536] : memref<128x1920xbf16, #tpu.memory_space<vmem>>, vector<128x256xbf16>
    %cst_34 = arith.constant dense<0.000000e+00> : vector<16x256xf32>
    %63 = tpu.matmul %59, %62, %cst_34 {dimension_numbers = #tpu.dot_dimension_numbers<[1], [0], [0], [1], [0, 0, 1, 1], [], []>} : vector<16x128xbf16>, vector<128x256xbf16>, vector<16x256xf32> -> vector<16x256xf32>
    %64 = vector.extract_strided_slice %63 {offsets = [0, 0], sizes = [16, 128], strides = [1, 1]} : vector<16x256xf32> to vector<16x128xf32>
    %c7 = arith.constant 7 : index
    %c0_35 = arith.constant 0 : index
    %c0_36 = arith.constant 0 : index
    %65 = vector.load %arg3[%c7, %c0_35, %c0_36] : memref<9x16x128xf32, #tpu.memory_space<vmem>>, vector<1x16x128xf32>
    %66 = vector.shape_cast %65 : vector<1x16x128xf32> to vector<16x128xf32>
    %67 = arith.addf %64, %66 : vector<16x128xf32>
    %68 = arith.truncf %67 : vector<16x128xf32> to vector<16x128xbf16>
    %69 = vector.extract_strided_slice %63 {offsets = [0, 128], sizes = [16, 128], strides = [1, 1]} : vector<16x256xf32> to vector<16x128xf32>
    %70 = arith.addf %61, %69 : vector<16x128xf32>
    %c0_37 = arith.constant 0 : index
    %c1792 = arith.constant 1792 : index
    %71 = vector.load %arg2[%c0_37, %c1792] : memref<128x1920xbf16, #tpu.memory_space<vmem>>, vector<128x128xbf16>
    %cst_38 = arith.constant dense<0.000000e+00> : vector<16x128xf32>
    %72 = tpu.matmul %68, %71, %cst_38 {dimension_numbers = #tpu.dot_dimension_numbers<[1], [0], [0], [1], [0, 0, 1, 1], [], []>} : vector<16x128xbf16>, vector<128x128xbf16>, vector<16x128xf32> -> vector<16x128xf32>
    %73 = arith.addf %70, %72 : vector<16x128xf32>
    %c0_39 = arith.constant 0 : index
    %c0_40 = arith.constant 0 : index
    %74 = vector.load %arg4[%c0_39, %c0_40] : memref<16x128xf32, #tpu.memory_space<vmem>>, vector<16x128xf32>
    tpu.vector_store %arg4[%c0_39, %c0_40], %73 {strides = array<i32>} : memref<16x128xf32, #tpu.memory_space<vmem>>, vector<16x128xf32>,
    return
  }
}

</mosaic_0001>

<bundles_post_ra>
// kernel: mlp_chain.1
= control target key start
LH: loop header
LB: loop body
LE: loop exit
PB: predicated region body
PF: predicated region fallthrough
CT: control target
= control target key end

     0   :  { %v1909_v2 = vmov 0.0   ;;  %s2456_s0 = inlined_call_operand.vmem [shape: bf16[16,256], index: 0, kind: input, shape index: {}]   ;;  %s2457_s1 = inlined_call_operand.vmem [shape: bf16[256,128], index: 1, kind: input, shape index: {}]   ;;  %s2458_s2 = inlined_call_operand.vmem [shape: bf16[128,1920], index: 2, kind: input, shape index: {}]   ;;  %s2459_s3 = inlined_call_operand.vmem [shape: f32[9,16,128], index: 3, kind: input, shape index: {}]   ;;  %s2460_s4 = inlined_call_operand.hbm [shape: f32[16,128], index: 4, kind: output, shape index: {}]  }
   0x1   :  { %v1698_v0 = vld [vmem:[%s2457_s1 + $0x40] sm:$0xff]   ;;  %1632 = vmatprep.subr.bf16.mxu1 %v1909_v2  ;;  %v1700_v3 = vld [vmem:[%s2457_s1 + $0x48] sm:$0xff]   ;;  %v1702_v5 = vld [vmem:[%s2457_s1 + $0x50] sm:$0xff]  }
   0x2   :  { %v1699_v1 = vld [vmem:[%s2457_s1] sm:$0xff]   ;;  %1583 = vmatprep.subr.bf16.mxu0 %v1698_v0  ;;  %v1701_v4 = vld [vmem:[%s2457_s1 + $0x8] sm:$0xff]   ;;  %v1703_v6 = vld [vmem:[%s2457_s1 + $0x10] sm:$0xff]  }
   0x3   :  { %1584 = vmatpush3.bf16.msra.mxu0 %v1699_v1  ;;  %v1704_v7 = vld [vmem:[%s2457_s1 + $0x58] sm:$0xff]   ;;  %v1706_v9 = vld [vmem:[%s2457_s1 + $0x60] sm:$0xff]   ;;  %v1708_v11 = vld [vmem:[%s2457_s1 + $0x68] sm:$0xff]  }
   0x4   :  { %1585 = vmatprep.subr.bf16.mxu0 %v1700_v3  ;;  %v1705_v8 = vld [vmem:[%s2457_s1 + $0x18] sm:$0xff]   ;;  %v1707_v10 = vld [vmem:[%s2457_s1 + $0x20] sm:$0xff]   ;;  %v1709_v12 = vld [vmem:[%s2457_s1 + $0x28] sm:$0xff]  }
   0x5   :  { %v1716_v13 = vld [vmem:[%s2456_s0 + $0x4] ss:$8 sps:$4 sm:$0xff]   ;;  %v1717_v14 = vld [vmem:[%s2458_s2] ss:$60 sps:$4 sm:$0xff]   ;;  %v1710_v15 = vld [vmem:[%s2457_s1 + $0x70] sm:$0xff]  }
   0x6   :  { %193 = vmatprep.mubr.bf16.mxu0 %v1716_v13  ;;  %1633 = vmatpush3.bf16.msra.mxu1 %v1717_v14  ;;  %v1718_v16 = vld [vmem:[%s2458_s2 + $0x78] ss:$60 sps:$4 sm:$0xff]   ;;  %v1719_v19 = vld [vmem:[%s2458_s2 + $0xf0] ss:$60 sps:$4 sm:$0xff]   ;;  %v1720_v21 = vld [vmem:[%s2458_s2 + $0x168] ss:$60 sps:$4 sm:$0xff]  }
   0x7   :  { %1586 = vmatpush3.bf16.msra.mxu0 %v1701_v4  ;;  %v1711_v17 = vld [vmem:[%s2457_s1 + $0x30] sm:$0xff]   ;;  %1634 = vmatprep.subr.bf16.mxu1 %v1909_v2  ;;  %v1712_v18 = vld [vmem:[%s2457_s1 + $0x78] sm:$0xff]   ;;  %v1714_v22 = vld [vmem:[%s2456_s0] ss:$8 sps:$4 sm:$0xff]  }
   0x8   :  { %1587 = vmatprep.subr.bf16.mxu0 %v1702_v5  ;;  %v1713_v20 = vld [vmem:[%s2457_s1 + $0x38] sm:$0xff]  }
   0x9   :  { %v1721_v23 = vld [vmem:[%s2458_s2 + $0x1e0] ss:$60 sps:$4 sm:$0xff]   ;;  %v1722_v24 = vld [vmem:[%s2458_s2 + $0x258] ss:$60 sps:$4 sm:$0xff]  }
   0xa   :  { %1635 = vmatpush3.bf16.msra.mxu1 %v1718_v16 }
   0xb   :  { %1588 = vmatpush3.bf16.msra.mxu0 %v1703_v6  ;;  %1636 = vmatprep.subr.bf16.mxu1 %v1909_v2 }
   0xc   :  { %1589 = vmatprep.subr.bf16.mxu0 %v1704_v7 }
   0xe   :  { %1637 = vmatpush3.bf16.msra.mxu1 %v1719_v19 }
   0xf   :  { %1590 = vmatpush3.bf16.msra.mxu0 %v1705_v8  ;;  %1638 = vmatprep.subr.bf16.mxu1 %v1909_v2 }
  0x10   :  { %1591 = vmatprep.subr.bf16.mxu0 %v1706_v9 }
  0x12   :  { %1639 = vmatpush3.bf16.msra.mxu1 %v1720_v21 }
  0x13   :  { %1592 = vmatpush3.bf16.msra.mxu0 %v1707_v10  ;;  %1640 = vmatprep.subr.bf16.mxu1 %v1909_v2 }
  0x14   :  { %1593 = vmatprep.subr.bf16.mxu0 %v1708_v11 }
  0x16   :  { %1641 = vmatpush3.bf16.msra.mxu1 %v1721_v23 }
  0x17   :  { %1594 = vmatpush3.bf16.msra.mxu0 %v1709_v12  ;;  %1642 = vmatprep.subr.bf16.mxu1 %v1909_v2 }
  0x18   :  { %1595 = vmatprep.subr.bf16.mxu0 %v1710_v15 }
  0x1a   :  { %1643 = vmatpush3.bf16.msra.mxu1 %v1722_v24 }
  0x1b   :  { %1596 = vmatpush3.bf16.msra.mxu0 %v1711_v17  ;;  %1644 = vmatprep.subr.bf16.mxu1 %v1909_v2 }
  0x1c   :  { %1597 = vmatprep.subr.bf16.mxu0 %v1712_v18 }
  0x1f   :  { %1598 = vmatpush3.bf16.msra.mxu0 %v1713_v20 }
  0x22   :  { %194 = vmatmul.mubr.bf16.vlgmr.msra.gmra.mrb[0].mxu0 %v1714_v22 }
  0x23   :  { %9 = vsyncpa [#allocation3], 0  ;;  %v1723_v25 = vld [vmem:[%s2458_s2 + $0x2d0] ss:$60 sps:$4 sm:$0xff]   ;;  %v1724_v26 = vld [vmem:[%s2458_s2 + $0x348] ss:$60 sps:$4 sm:$0xff]  }
  0x24   :  { %1645 = vmatpush3.bf16.msra.mxu1 %v1723_v25  ;;  %vm1910_vm0 = vmmov 0   ;;  %v1725_v27 = vld [vmem:[%s2458_s2 + $0x4] ss:$60 sps:$4 sm:$0xff]   ;;  %v1729_v30 = vld [vmem:[%s2458_s2 + $0x7c] ss:$60 sps:$4 sm:$0xff]   ;;  %v54_v46 = vld [vmem:[%s2459_s3 + $0x8] sm:$0xff] }
  0x25   :  { %1646 = vmatprep.subr.bf16.mxu1 %v1909_v2  ;;  %1648 = vmatprep.mubr.msk.bf16.mxu1 %vm1910_vm0, %v1909_v2  ;;  %v1727_v28 = vld [vmem:[%s2458_s2 + $0x8] ss:$60 sps:$4 sm:$0xff]   ;;  %v1731_v29 = vld [vmem:[%s2458_s2 + $0x80] ss:$60 sps:$4 sm:$0xff]   ;;  %v1735_v31 = vld [vmem:[%s2458_s2 + $0xf8] ss:$60 sps:$4 sm:$0xff]  }
  0x26   :  { %472 = vmatprep.subr.bf16.mxu0 %v1727_v28  ;;  %v1733_v32 = vld [vmem:[%s2458_s2 + $0xf4] ss:$60 sps:$4 sm:$0xff]   ;;  %v1737_v34 = vld [vmem:[%s2458_s2 + $0x16c] ss:$60 sps:$4 sm:$0xff]   ;;  %v1741_v36 = vld [vmem:[%s2458_s2 + $0x1e4] ss:$60 sps:$4 sm:$0xff]  }
  0x27   :  { %473 = vmatpush1.bf16.msra.mxu0 %v1725_v27  ;;  %v1739_v33 = vld [vmem:[%s2458_s2 + $0x170] ss:$60 sps:$4 sm:$0xff]   ;;  %v1743_v35 = vld [vmem:[%s2458_s2 + $0x1e8] ss:$60 sps:$4 sm:$0xff]   ;;  %v1747_v37 = vld [vmem:[%s2458_s2 + $0x260] ss:$60 sps:$4 sm:$0xff]  }
  0x28   :  { %1647 = vmatpush3.bf16.msra.mxu1 %v1724_v26  ;;  %474 = vmatprep.subr.bf16.mxu0 %v1731_v29  ;;  %v1745_v38 = vld [vmem:[%s2458_s2 + $0x25c] ss:$60 sps:$4 sm:$0xff]   ;;  %v1749_v40 = vld [vmem:[%s2458_s2 + $0x2d4] ss:$60 sps:$4 sm:$0xff]   ;;  %v53_v45 = vld [vmem:[%s2459_s3] sm:$0xff]  ;;  %v1911_v62 = vmov 0  }
  0x29   :  { %1652 = vmatprep.subr.bf16.mxu1 %v1909_v2  ;;  %v1751_v39 = vld [vmem:[%s2458_s2 + $0x2d8] ss:$60 sps:$4 sm:$0xff]   ;;  %v1728_v51 = vld [vmem:[%s2458_s2 + $0xc] ss:$60 sps:$4 sm:$0xff]   ;;  %v1732_v53 = vld [vmem:[%s2458_s2 + $0x84] ss:$60 sps:$4 sm:$0xff]   ;;  %504 = vmatprep.mubr.bf16.mxu0 %v1911_v62 }
  0x2a   :  { %v1736_v54 = vld [vmem:[%s2458_s2 + $0xfc] ss:$60 sps:$4 sm:$0xff]   ;;  %v1740_v55 = vld [vmem:[%s2458_s2 + $0x174] ss:$60 sps:$4 sm:$0xff]   ;;  %v1744_v56 = vld [vmem:[%s2458_s2 + $0x1ec] ss:$60 sps:$4 sm:$0xff]  }
  0x2b   :  { %475 = vmatpush1.bf16.msra.mxu0 %v1729_v30  ;;  %v1748_v57 = vld [vmem:[%s2458_s2 + $0x264] ss:$60 sps:$4 sm:$0xff]   ;;  %v1752_v58 = vld [vmem:[%s2458_s2 + $0x2dc] ss:$60 sps:$4 sm:$0xff]   ;;  %v1755_v59 = vld [vmem:[%s2458_s2 + $0x350] ss:$60 sps:$4 sm:$0xff]  }
  0x2c   :  { %476 = vmatprep.subr.bf16.mxu0 %v1735_v31  ;;  %v1753_v60 = vld [vmem:[%s2458_s2 + $0x34c] ss:$60 sps:$4 sm:$0xff]   ;;  %v1756_v61 = vld [vmem:[%s2458_s2 + $0x354] ss:$60 sps:$4 sm:$0xff]   ;;  %v1448_v3 = vld [vmem:[%s2459_s3 + $0x18] sm:$0xff] }
  0x2d   :  { %v1759_v63 = vld [vmem:[%s2458_s2 + $0x14] ss:$60 sps:$4 sm:$0xff]   ;;  %v1762_v11 = vld [vmem:[%s2458_s2 + $0x8c] ss:$60 sps:$4 sm:$0xff]   ;;  %v1765_v13 = vld [vmem:[%s2458_s2 + $0x104] ss:$60 sps:$4 sm:$0xff]  }
  0x2e   :  { %v1447_v0 = vld [vmem:[%s2459_s3 + $0x10] sm:$0xff]  ;;  %v1760_v12 = vld [vmem:[%s2458_s2 + $0x88] ss:$60 sps:$4 sm:$0xff]   ;;  %v1763_v14 = vld [vmem:[%s2458_s2 + $0x100] ss:$60 sps:$4 sm:$0xff]  }
  0x2f   :  { %477 = vmatpush1.bf16.msra.mxu0 %v1733_v32  ;;  %v1757_v9 = vld [vmem:[%s2458_s2 + $0x10] ss:$60 sps:$4 sm:$0xff]   ;;  %v1768_v15 = vld [vmem:[%s2458_s2 + $0x17c] ss:$60 sps:$4 sm:$0xff]   ;;  %v1772_v20 = vld [vmem:[%s2458_s2 + $0x268] ss:$60 sps:$4 sm:$0xff]  }
  0x30   :  { %478 = vmatprep.subr.bf16.mxu0 %v1739_v33  ;;  %v1766_v16 = vld [vmem:[%s2458_s2 + $0x178] ss:$60 sps:$4 sm:$0xff]   ;;  %v1769_v18 = vld [vmem:[%s2458_s2 + $0x1f0] ss:$60 sps:$4 sm:$0xff]   ;;  %v1777_v21 = vld [vmem:[%s2458_s2 + $0x2e4] ss:$60 sps:$4 sm:$0xff]  }
  0x31   :  { %v1771_v17 = vld [vmem:[%s2458_s2 + $0x1f4] ss:$60 sps:$4 sm:$0xff]   ;;  %v1774_v19 = vld [vmem:[%s2458_s2 + $0x26c] ss:$60 sps:$4 sm:$0xff]   ;;  %v1775_v22 = vld [vmem:[%s2458_s2 + $0x2e0] ss:$60 sps:$4 sm:$0xff]  }
  0x32   :  { %v1780_v23 = vld [vmem:[%s2458_s2 + $0x35c] ss:$60 sps:$4 sm:$0xff]   ;;  %v1786_v27 = vld [vmem:[%s2458_s2 + $0x94] ss:$60 sps:$4 sm:$0xff]   ;;  %v1789_v29 = vld [vmem:[%s2458_s2 + $0x10c] ss:$60 sps:$4 sm:$0xff]  }
  0x33   :  { %479 = vmatpush1.bf16.msra.mxu0 %v1737_v34  ;;  %v1778_v24 = vld [vmem:[%s2458_s2 + $0x358] ss:$60 sps:$4 sm:$0xff]   ;;  %v1784_v28 = vld [vmem:[%s2458_s2 + $0x90] ss:$60 sps:$4 sm:$0xff]   ;;  %v1787_v30 = vld [vmem:[%s2458_s2 + $0x108] ss:$60 sps:$4 sm:$0xff]  }
  0x34   :  { %480 = vmatprep.subr.bf16.mxu0 %v1743_v35  ;;  %v1781_v25 = vld [vmem:[%s2458_s2 + $0x18] ss:$60 sps:$4 sm:$0xff]   ;;  %v1792_v31 = vld [vmem:[%s2458_s2 + $0x184] ss:$60 sps:$4 sm:$0xff]  }
  0x35   :  { %v1783_v26 = vld [vmem:[%s2458_s2 + $0x1c] ss:$60 sps:$4 sm:$0xff]   ;;  %v1798_v35 = vld [vmem:[%s2458_s2 + $0x274] ss:$60 sps:$4 sm:$0xff]  }
  0x36   :  { %v1790_v32 = vld [vmem:[%s2458_s2 + $0x180] ss:$60 sps:$4 sm:$0xff]   ;;  %v1793_v34 = vld [vmem:[%s2458_s2 + $0x1f8] ss:$60 sps:$4 sm:$0xff]  }
  0x37   :  { %481 = vmatpush1.bf16.msra.mxu0 %v1741_v36  ;;  %v1795_v33 = vld [vmem:[%s2458_s2 + $0x1fc] ss:$60 sps:$4 sm:$0xff]   ;;  %v1796_v36 = vld [vmem:[%s2458_s2 + $0x270] ss:$60 sps:$4 sm:$0xff]  }
  0x38   :  { %482 = vmatprep.subr.bf16.mxu0 %v1747_v37 }
  0x3b   :  { %483 = vmatpush1.bf16.msra.mxu0 %v1745_v38  ;;  %v1481_v38 = vld [vmem:[%s2459_s3 + $0x20] sm:$0xff] }
  0x3c   :  { %484 = vmatprep.subr.bf16.mxu0 %v1751_v39 }
  0x3f   :  { %485 = vmatpush1.bf16.msra.mxu0 %v1749_v40  ;;  %v1482_v40 = vld [vmem:[%s2459_s3 + $0x28] sm:$0xff] }
  0x40   :  { %486 = vmatprep.subr.bf16.mxu0 %v1755_v59  ;;  %v1811_v59 = vld [vmem:[%s2458_s2 + $0x110] ss:$60 sps:$4 sm:$0xff]  }
  0x43   :  { %487 = vmatpush1.bf16.msra.mxu0 %v1753_v60  ;;  %v1816_v60 = vld [vmem:[%s2458_s2 + $0x18c] ss:$60 sps:$4 sm:$0xff]  }
  0x44   :  { %663 = vmatprep.subr.bf16.mxu0 %v1759_v63  ;;  %v1819_v63 = vld [vmem:[%s2458_s2 + $0x204] ss:$60 sps:$4 sm:$0xff]  }
  0xf5   :  { %v1599_v41 = vpop.f32.mrb[0].mxu0 }
  0xf6   :  { %v1600_v42 = vpop.f32.mrb[1].mxu0 }
  0xf7   :  { %v1601_v43 = vadd.f32 %v1600_v42, %v1599_v41  ;;  %v1602_v44 = vpop.f32.mrb[2].mxu0 }
  0xf8   :  { %v1603_v47 = vpop.f32.mrb[3].mxu0 }
  0xf9   :  { %v1604_v48 = vadd.f32 %v1603_v47, %v1602_v44  ;;  %v196_v49 = vadd.f32 %v1601_v43, %v53_v45 }
  0xfb   :  { %v199_v50 = vadd.f32 %v1604_v48, %v54_v46 }
  0xfd   :  { %v202_v52 = vpack.c.bf16 %v199_v50, %v196_v49  ;;  %v1801_v50 = vld [vmem:[%s2458_s2 + $0x2ec] ss:$60 sps:$4 sm:$0xff]  }
  0xff   :  { %1649 = vmatmul.mubr.bf16.vlgmr.msra.gmra.mrb[0].mxu1 %v202_v52  ;;  %v1804_v52 = vld [vmem:[%s2458_s2 + $0x364] ss:$60 sps:$4 sm:$0xff]  }
 0x100   :  { %1653 = vmatpush3.bf16.msra.mxu1 %v1728_v51  ;;  %1668 = vmatprep.mubr.msk.bf16.mxu1 %vm1910_vm0, %v1909_v2  ;;  %v1799_v51 = vld [vmem:[%s2458_s2 + $0x2e8] ss:$60 sps:$4 sm:$0xff]  }
 0x101   :  { %1654 = vmatprep.subr.bf16.mxu1 %v1909_v2 }
 0x104   :  { %1655 = vmatpush3.bf16.msra.mxu1 %v1732_v53  ;;  %v1802_v53 = vld [vmem:[%s2458_s2 + $0x360] ss:$60 sps:$4 sm:$0xff]  }
 0x105   :  { %1656 = vmatprep.subr.bf16.mxu1 %v1909_v2 }
 0x108   :  { %1657 = vmatpush3.bf16.msra.mxu1 %v1736_v54  ;;  %v1805_v54 = vld [vmem:[%s2458_s2 + $0x20] ss:$60 sps:$4 sm:$0xff]  }
 0x109   :  { %1658 = vmatprep.subr.bf16.mxu1 %v1909_v2 }
 0x10c   :  { %1659 = vmatpush3.bf16.msra.mxu1 %v1740_v55  ;;  %v1807_v55 = vld [vmem:[%s2458_s2 + $0x24] ss:$60 sps:$4 sm:$0xff]  }
 0x10d   :  { %1660 = vmatprep.subr.bf16.mxu1 %v1909_v2 }
 0x110   :  { %1661 = vmatpush3.bf16.msra.mxu1 %v1744_v56  ;;  %v1810_v56 = vld [vmem:[%s2458_s2 + $0x9c] ss:$60 sps:$4 sm:$0xff]  }
 0x111   :  { %1662 = vmatprep.subr.bf16.mxu1 %v1909_v2 }
 0x114   :  { %1663 = vmatpush3.bf16.msra.mxu1 %v1748_v57  ;;  %v1808_v57 = vld [vmem:[%s2458_s2 + $0x98] ss:$60 sps:$4 sm:$0xff]  }
 0x115   :  { %1664 = vmatprep.subr.bf16.mxu1 %v1909_v2 }
 0x118   :  { %1665 = vmatpush3.bf16.msra.mxu1 %v1752_v58  ;;  %v1813_v58 = vld [vmem:[%s2458_s2 + $0x114] ss:$60 sps:$4 sm:$0xff]  }
 0x119   :  { %1666 = vmatprep.subr.bf16.mxu1 %v1909_v2 }
 0x11c   :  { %1667 = vmatpush3.bf16.msra.mxu1 %v1756_v61  ;;  %v1814_v61 = vld [vmem:[%s2458_s2 + $0x188] ss:$60 sps:$4 sm:$0xff]  }
 0x11d   :  { %812 = vmatprep.subr.bf16.mxu1 %v1783_v26  ;;  %v1831_v26 = vld [vmem:[%s2458_s2 + $0x2c] ss:$60 sps:$4 sm:$0xff]  }
 0x1d2   :  { %v304_v1 = vpop.f32.mrb[0].mxu1 }
 0x1d3   :  { %v1650_v4 = vpop.f32.mrb[1].mxu1  ;;  %v305_v6 = vadd.f32 %v1447_v0, %v304_v1  ;;  %v1817_v0 = vld [vmem:[%s2458_s2 + $0x200] ss:$60 sps:$4 sm:$0xff]  }
 0x1d4   :  { %v307_v5 = vpop.f32.mrb[2].mxu1  ;;  %v1822_v1 = vld [vmem:[%s2458_s2 + $0x27c] ss:$60 sps:$4 sm:$0xff]   ;;  %v1825_v4 = vld [vmem:[%s2458_s2 + $0x2f4] ss:$60 sps:$4 sm:$0xff]  }
 0x1d5   :  { %v308_v7 = vadd.f32 %v1448_v3, %v307_v5  ;;  %v1651_v8 = vpop.f32.mrb[3].mxu1  ;;  %v1820_v3 = vld [vmem:[%s2458_s2 + $0x278] ss:$60 sps:$4 sm:$0xff]   ;;  %v1823_v5 = vld [vmem:[%s2458_s2 + $0x2f0] ss:$60 sps:$4 sm:$0xff]  }
 0x1d7   :  { %v311_v10 = vpack.c.bf16 %v308_v7, %v305_v6  ;;  %v1483_v6 = vld [vmem:[%s2459_s3 + $0x80] sm:$0xff]  ;;  %v1484_v7 = vld [vmem:[%s2459_s3 + $0x88] sm:$0xff] }
 0x1d9   :  { %505 = vmatmul.mubr.bf16.vlgmr.msra.gmra.mrb[4].mxu0 %v311_v10  ;;  %1669 = vmatmul.mubr.bf16.vlgmr.msra.gmra.mrb[4].mxu1 %v311_v10 }
 0x1da   :  { %664 = vmatpush1.bf16.msra.mxu0 %v1757_v9  ;;  %695 = vmatprep.mubr.bf16.mxu0 %v1911_v62 }
 0x1db   :  { %665 = vmatprep.subr.bf16.mxu0 %v1762_v11  ;;  %844 = vmatprep.mubr.bf16.mxu1 %v1911_v62 }
 0x1dc   :  { %813 = vmatpush1.bf16.msra.mxu1 %v1781_v25  ;;  %v1829_v25 = vld [vmem:[%s2458_s2 + $0x28] ss:$60 sps:$4 sm:$0xff]  }
 0x1dd   :  { %814 = vmatprep.subr.bf16.mxu1 %v1786_v27  ;;  %v1834_v27 = vld [vmem:[%s2458_s2 + $0xa4] ss:$60 sps:$4 sm:$0xff]  }
 0x1de   :  { %666 = vmatpush1.bf16.msra.mxu0 %v1760_v12 }
 0x1df   :  { %667 = vmatprep.subr.bf16.mxu0 %v1765_v13  ;;  %v1501_v13 = vld [vmem:[%s2459_s3 + $0x30] sm:$0xff] }
 0x1e0   :  { %815 = vmatpush1.bf16.msra.mxu1 %v1784_v28  ;;  %v1832_v28 = vld [vmem:[%s2458_s2 + $0xa0] ss:$60 sps:$4 sm:$0xff]  }
 0x1e1   :  { %816 = vmatprep.subr.bf16.mxu1 %v1789_v29  ;;  %v1837_v29 = vld [vmem:[%s2458_s2 + $0x11c] ss:$60 sps:$4 sm:$0xff]  }
 0x1e2   :  { %668 = vmatpush1.bf16.msra.mxu0 %v1763_v14 }
 0x1e3   :  { %669 = vmatprep.subr.bf16.mxu0 %v1768_v15 }
 0x1e4   :  { %817 = vmatpush1.bf16.msra.mxu1 %v1787_v30  ;;  %v1835_v30 = vld [vmem:[%s2458_s2 + $0x118] ss:$60 sps:$4 sm:$0xff]  }
 0x1e5   :  { %818 = vmatprep.subr.bf16.mxu1 %v1792_v31  ;;  %v1840_v31 = vld [vmem:[%s2458_s2 + $0x194] ss:$60 sps:$4 sm:$0xff]  }
 0x1e6   :  { %670 = vmatpush1.bf16.msra.mxu0 %v1766_v16  ;;  %v1502_v16 = vld [vmem:[%s2459_s3 + $0x38] sm:$0xff] }
 0x1e7   :  { %671 = vmatprep.subr.bf16.mxu0 %v1771_v17 }
 0x1e8   :  { %819 = vmatpush1.bf16.msra.mxu1 %v1790_v32  ;;  %v1838_v32 = vld [vmem:[%s2458_s2 + $0x190] ss:$60 sps:$4 sm:$0xff]  }
 0x1e9   :  { %820 = vmatprep.subr.bf16.mxu1 %v1795_v33  ;;  %v1843_v33 = vld [vmem:[%s2458_s2 + $0x20c] ss:$60 sps:$4 sm:$0xff]  }
 0x1ea   :  { %672 = vmatpush1.bf16.msra.mxu0 %v1769_v18 }
 0x1eb   :  { %673 = vmatprep.subr.bf16.mxu0 %v1774_v19 }
 0x1ec   :  { %821 = vmatpush1.bf16.msra.mxu1 %v1793_v34  ;;  %v1841_v34 = vld [vmem:[%s2458_s2 + $0x208] ss:$60 sps:$4 sm:$0xff]  }
 0x1ed   :  { %822 = vmatprep.subr.bf16.mxu1 %v1798_v35  ;;  %v1846_v35 = vld [vmem:[%s2458_s2 + $0x284] ss:$60 sps:$4 sm:$0xff]  }
 0x1ee   :  { %674 = vmatpush1.bf16.msra.mxu0 %v1772_v20 }
 0x1ef   :  { %675 = vmatprep.subr.bf16.mxu0 %v1777_v21 }
 0x1f0   :  { %823 = vmatpush1.bf16.msra.mxu1 %v1796_v36  ;;  %v1844_v36 = vld [vmem:[%s2458_s2 + $0x280] ss:$60 sps:$4 sm:$0xff]  }
 0x1f1   :  { %824 = vmatprep.subr.bf16.mxu1 %v1801_v50  ;;  %v1852_v50 = vld [vmem:[%s2458_s2 + $0x374] ss:$60 sps:$4 sm:$0xff]  }
 0x1f2   :  { %676 = vmatpush1.bf16.msra.mxu0 %v1775_v22 }
 0x1f3   :  { %677 = vmatprep.subr.bf16.mxu0 %v1780_v23  ;;  %v1828_v23 = vld [vmem:[%s2458_s2 + $0x36c] ss:$60 sps:$4 sm:$0xff]  }
 0x1f4   :  { %825 = vmatpush1.bf16.msra.mxu1 %v1799_v51  ;;  %v1850_v51 = vld [vmem:[%s2458_s2 + $0x370] ss:$60 sps:$4 sm:$0xff]  }
 0x1f5   :  { %826 = vmatprep.subr.bf16.mxu1 %v1804_v52  ;;  %v1853_v52 = vld [vmem:[%s2458_s2 + $0x30] ss:$60 sps:$4 sm:$0xff]  }
 0x1f6   :  { %678 = vmatpush1.bf16.msra.mxu0 %v1778_v24  ;;  %v1826_v24 = vld [vmem:[%s2458_s2 + $0x368] ss:$60 sps:$4 sm:$0xff]  }
 0x1f7   :  { %959 = vmatprep.subr.bf16.mxu0 %v1807_v55  ;;  %v1861_v55 = vld [vmem:[%s2458_s2 + $0x124] ss:$60 sps:$4 sm:$0xff]  }
 0x1f8   :  { %827 = vmatpush1.bf16.msra.mxu1 %v1802_v53  ;;  %v1858_v53 = vld [vmem:[%s2458_s2 + $0xac] ss:$60 sps:$4 sm:$0xff]  }
 0x1f9   :  { %1106 = vmatprep.subr.bf16.mxu1 %v1831_v26 }
 0x2ac   :  { %v506_v37 = vpop.f32.mrb[4].mxu0  ;;  %v549_v39 = vpop.f32.mrb[4].mxu1 }
 0x2ad   :  { %v508_v41 = vpop.f32.mrb[5].mxu0  ;;  %v1670_v42 = vpop.f32.mrb[5].mxu1  ;;  %v559_v45 = vadd.f32 %v1481_v38, %v506_v37  ;;  %v565_v8 = vadd.f32 %v1483_v6, %v549_v39  ;;  %v1849_v37 = vld [vmem:[%s2458_s2 + $0x2fc] ss:$60 sps:$4 sm:$0xff]  }
 0x2ae   :  { %v510_v43 = vpop.f32.mrb[6].mxu0  ;;  %v552_v44 = vpop.f32.mrb[6].mxu1  ;;  %v1847_v38 = vld [vmem:[%s2458_s2 + $0x2f8] ss:$60 sps:$4 sm:$0xff]  }
 0x2af   :  { %v560_v46 = vadd.f32 %v1482_v40, %v510_v43  ;;  %v512_v47 = vpop.f32.mrb[7].mxu0  ;;  %v1671_v48 = vpop.f32.mrb[7].mxu1  ;;  %v566_v12 = vadd.f32 %v1484_v7, %v552_v44  ;;  %v1519_v40 = vld [vmem:[%s2459_s3 + $0x40] sm:$0xff] }
 0x2b1   :  { %v561_v49 = vpack.c.bf16 %v560_v46, %v559_v45 }
 0x2b3   :  { %696 = vmatmul.mubr.bf16.vlgmr.msra.gmra.mrb[8].mxu0 %v561_v49 }
 0x2b4   :  { %991 = vmatprep.mubr.bf16.mxu0 %v1911_v62  ;;  %960 = vmatpush1.bf16.msra.mxu0 %v1805_v54  ;;  %v1856_v54 = vld [vmem:[%s2458_s2 + $0xa8] ss:$60 sps:$4 sm:$0xff]  }
 0x2b5   :  { %961 = vmatprep.subr.bf16.mxu0 %v1810_v56  ;;  %v1859_v56 = vld [vmem:[%s2458_s2 + $0x120] ss:$60 sps:$4 sm:$0xff]  }
 0x2b8   :  { %962 = vmatpush1.bf16.msra.mxu0 %v1808_v57  ;;  %v1864_v57 = vld [vmem:[%s2458_s2 + $0x19c] ss:$60 sps:$4 sm:$0xff]  }
 0x2b9   :  { %963 = vmatprep.subr.bf16.mxu0 %v1813_v58  ;;  %v1862_v58 = vld [vmem:[%s2458_s2 + $0x198] ss:$60 sps:$4 sm:$0xff]  }
 0x2bc   :  { %964 = vmatpush1.bf16.msra.mxu0 %v1811_v59  ;;  %v1867_v59 = vld [vmem:[%s2458_s2 + $0x214] ss:$60 sps:$4 sm:$0xff]  }
 0x2bd   :  { %965 = vmatprep.subr.bf16.mxu0 %v1816_v60  ;;  %v1865_v60 = vld [vmem:[%s2458_s2 + $0x210] ss:$60 sps:$4 sm:$0xff]  }
 0x2c0   :  { %966 = vmatpush1.bf16.msra.mxu0 %v1814_v61  ;;  %v1870_v61 = vld [vmem:[%s2458_s2 + $0x28c] ss:$60 sps:$4 sm:$0xff]  }
 0x2c1   :  { %967 = vmatprep.subr.bf16.mxu0 %v1819_v63  ;;  %v1868_v63 = vld [vmem:[%s2458_s2 + $0x288] ss:$60 sps:$4 sm:$0xff]  }
 0x2c4   :  { %968 = vmatpush1.bf16.msra.mxu0 %v1817_v0  ;;  %v1873_v0 = vld [vmem:[%s2458_s2 + $0x304] ss:$60 sps:$4 sm:$0xff]  }
 0x2c5   :  { %969 = vmatprep.subr.bf16.mxu0 %v1822_v1  ;;  %v1871_v1 = vld [vmem:[%s2458_s2 + $0x300] ss:$60 sps:$4 sm:$0xff]  }
 0x2c8   :  { %970 = vmatpush1.bf16.msra.mxu0 %v1820_v3 }
 0x2c9   :  { %971 = vmatprep.subr.bf16.mxu0 %v1825_v4  ;;  %v1537_v4 = vld [vmem:[%s2459_s3 + $0x50] sm:$0xff] }
 0x2cc   :  { %972 = vmatpush1.bf16.msra.mxu0 %v1823_v5  ;;  %v1538_v5 = vld [vmem:[%s2459_s3 + $0x58] sm:$0xff] }
 0x2cd   :  { %973 = vmatprep.subr.bf16.mxu0 %v1828_v23  ;;  %v1555_v23 = vld [vmem:[%s2459_s3 + $0x60] sm:$0xff] }
 0x2d0   :  { %974 = vmatpush1.bf16.msra.mxu0 %v1826_v24  ;;  %v1556_v24 = vld [vmem:[%s2459_s3 + $0x68] sm:$0xff] }
 0x386   :  { %v697_v9 = vpop.f32.mrb[8].mxu0 }
 0x387   :  { %v706_v10 = vadd.f32 %v697_v9, %v508_v41  ;;  %v699_v11 = vpop.f32.mrb[9].mxu0  ;;  %v1520_v41 = vld [vmem:[%s2459_s3 + $0x48] sm:$0xff] }
 0x388   :  { %v714_v14 = vadd.f32 %v699_v11, %v565_v8  ;;  %v701_v15 = vpop.f32.mrb[10].mxu0 }
 0x389   :  { %v707_v17 = vadd.f32 %v701_v15, %v512_v47  ;;  %v703_v18 = vpop.f32.mrb[11].mxu0  ;;  %v711_v20 = vadd.f32 %v1501_v13, %v706_v10  ;;  %v1874_v15 = vld [vmem:[%s2458_s2 + $0x378] ss:$60 sps:$4 sm:$0xff]  }
 0x38a   :  { %v715_v19 = vadd.f32 %v703_v18, %v566_v12  ;;  %v1879_v18 = vld [vmem:[%s2458_s2 + $0x128] ss:$60 sps:$4 sm:$0xff]  }
 0x38b   :  { %v712_v21 = vadd.f32 %v1502_v16, %v707_v17  ;;  %v1877_v16 = vld [vmem:[%s2458_s2 + $0x38] ss:$60 sps:$4 sm:$0xff]   ;;  %v1878_v17 = vld [vmem:[%s2458_s2 + $0xb0] ss:$60 sps:$4 sm:$0xff]  }
 0x38d   :  { %v713_v22 = vpack.c.bf16 %v712_v21, %v711_v20  ;;  %v1881_v20 = vld [vmem:[%s2458_s2 + $0x218] ss:$60 sps:$4 sm:$0xff]   ;;  %v1882_v21 = vld [vmem:[%s2458_s2 + $0x290] ss:$60 sps:$4 sm:$0xff]  }
 0x38f   :  { %845 = vmatmul.mubr.bf16.vlgmr.msra.gmra.mrb[8].mxu1 %v713_v22 }
 0x390   :  { %1138 = vmatprep.mubr.bf16.mxu1 %v1911_v62  ;;  %1107 = vmatpush1.bf16.msra.mxu1 %v1829_v25 }
 0x391   :  { %1108 = vmatprep.subr.bf16.mxu1 %v1834_v27 }
 0x394   :  { %1109 = vmatpush1.bf16.msra.mxu1 %v1832_v28 }
 0x395   :  { %1110 = vmatprep.subr.bf16.mxu1 %v1837_v29 }
 0x398   :  { %1111 = vmatpush1.bf16.msra.mxu1 %v1835_v30 }
 0x399   :  { %1112 = vmatprep.subr.bf16.mxu1 %v1840_v31 }
 0x39c   :  { %1113 = vmatpush1.bf16.msra.mxu1 %v1838_v32 }
 0x39d   :  { %1114 = vmatprep.subr.bf16.mxu1 %v1843_v33  ;;  %v1883_v33 = vld [vmem:[%s2458_s2 + $0x308] ss:$60 sps:$4 sm:$0xff]  }
 0x3a0   :  { %1115 = vmatpush1.bf16.msra.mxu1 %v1841_v34  ;;  %v1884_v34 = vld [vmem:[%s2458_s2 + $0x380] ss:$60 sps:$4 sm:$0xff]  }
 0x3a1   :  { %1116 = vmatprep.subr.bf16.mxu1 %v1846_v35 }
 0x3a4   :  { %1117 = vmatpush1.bf16.msra.mxu1 %v1844_v36  ;;  %v1573_v36 = vld [vmem:[%s2459_s3 + $0x70] sm:$0xff] }
 0x3a5   :  { %1118 = vmatprep.subr.bf16.mxu1 %v1849_v37  ;;  %v1574_v37 = vld [vmem:[%s2459_s3 + $0x78] sm:$0xff] }
 0x3a8   :  { %1119 = vmatpush1.bf16.msra.mxu1 %v1847_v38 }
 0x3a9   :  { %1120 = vmatprep.subr.bf16.mxu1 %v1852_v50 }
 0x3ac   :  { %1121 = vmatpush1.bf16.msra.mxu1 %v1850_v51 }
 0x3ad   :  { %1672 = vmatprep.subr.bf16.mxu1 %v1909_v2 }
 0x462   :  { %v846_v39 = vpop.f32.mrb[8].mxu1 }
 0x463   :  { %v848_v42 = vpop.f32.mrb[9].mxu1  ;;  %v858_v45 = vadd.f32 %v1519_v40, %v846_v39 }
 0x464   :  { %v861_v43 = vadd.f32 %v848_v42, %v714_v14  ;;  %v850_v44 = vpop.f32.mrb[10].mxu1  ;;  %v1876_v14 = vld [vmem:[%s2458_s2 + $0x37c] ss:$60 sps:$4 sm:$0xff]  }
 0x465   :  { %v859_v46 = vadd.f32 %v1520_v41, %v850_v44  ;;  %v852_v47 = vpop.f32.mrb[11].mxu1 }
 0x466   :  { %v862_v48 = vadd.f32 %v852_v47, %v715_v19  ;;  %v1880_v19 = vld [vmem:[%s2458_s2 + $0x1a0] ss:$60 sps:$4 sm:$0xff]  }
 0x467   :  { %v860_v49 = vpack.c.bf16 %v859_v46, %v858_v45 }
 0x469   :  { %992 = vmatmul.mubr.bf16.vlgmr.msra.gmra.mrb[12].mxu0 %v860_v49 }
 0x46a   :  { %1285 = vmatprep.mubr.bf16.mxu0 %v1911_v62  ;;  %v1855_v62 = vld [vmem:[%s2458_s2 + $0x34] ss:$60 sps:$4 sm:$0xff]   ;;  %s1912_s2 = smov [#allocation2]  }
 0x46b   :  { %1253 = vmatprep.subr.bf16.mxu0 %v1855_v62  ;;  %s1418_s21 = sshll.u32 %s1912_s2, 4  ;;  %s1419_s21 = int_to_ptr.vmem [resolvable:$true] %s1418_s21 }
 0x46c   :  { %1254 = vmatpush1.bf16.msra.mxu0 %v1853_v52  ;;  %s1885_s3 = scalar_lea.vmem %s1419_s21, 256  ;;  %p1890_p1 = scmp.lt.s32.totalorder %s1419_s21, %s1419_s21 }
 0x46d   :  { %1255 = vmatprep.subr.bf16.mxu0 %v1858_v53  ;;  %p1886_p0 = scmp.ne.s32.totalorder %s1419_s21, %s1885_s3  ;;  %p1891_p2 = scmp.lt.s32.totalorder %s1885_s3, %s1885_s3 }
 0x46f   :  { %p1892_p3 = por %p1891_p2, %p1890_p1 }
 0x470   :  { %1256 = vmatpush1.bf16.msra.mxu0 %v1856_v54 }
 0x471   :  { %1257 = vmatprep.subr.bf16.mxu0 %v1861_v55  ;;  %p1893_p4 = pnand %p1892_p3, %p1886_p0 }
 0x474   :  { %1258 = vmatpush1.bf16.msra.mxu0 %v1859_v56 }
 0x475   :  { %1259 = vmatprep.subr.bf16.mxu0 %v1864_v57 }
 0x478   :  { %1260 = vmatpush1.bf16.msra.mxu0 %v1862_v58 }
 0x479   :  { %1261 = vmatprep.subr.bf16.mxu0 %v1867_v59 }
 0x47c   :  { %1262 = vmatpush1.bf16.msra.mxu0 %v1865_v60 }
 0x47d   :  { %1263 = vmatprep.subr.bf16.mxu0 %v1870_v61 }
 0x480   :  { %1264 = vmatpush1.bf16.msra.mxu0 %v1868_v63 }
 0x481   :  { %1265 = vmatprep.subr.bf16.mxu0 %v1873_v0 }
 0x484   :  { %1266 = vmatpush1.bf16.msra.mxu0 %v1871_v1 }
 0x485   :  { %1267 = vmatprep.subr.bf16.mxu0 %v1876_v14 }
 0x488   :  { %1268 = vmatpush1.bf16.msra.mxu0 %v1874_v15 }
 0x53c   :  { %v993_v3 = vpop.f32.mrb[12].mxu0 }
 0x53d   :  { %v995_v6 = vpop.f32.mrb[13].mxu0  ;;  %v1005_v9 = vadd.f32 %v1537_v4, %v993_v3 }
 0x53e   :  { %v1008_v7 = vadd.f32 %v995_v6, %v861_v43  ;;  %v997_v8 = vpop.f32.mrb[14].mxu0 }
 0x53f   :  { %v1006_v10 = vadd.f32 %v1538_v5, %v997_v8  ;;  %v999_v11 = vpop.f32.mrb[15].mxu0 }
 0x540   :  { %v1009_v12 = vadd.f32 %v999_v11, %v862_v48 }
 0x541   :  { %v1007_v13 = vpack.c.bf16 %v1006_v10, %v1005_v9 }
 0x543   :  { %1139 = vmatmul.mubr.bf16.vlgmr.msra.gmra.mrb[12].mxu1 %v1007_v13 }
 0x544   :  { %1688 = vmatprep.mubr.msk.bf16.mxu1 %vm1910_vm0, %v1909_v2  ;;  %1673 = vmatpush3.bf16.msra.mxu1 %v1877_v16 }
 0x545   :  { %1674 = vmatprep.subr.bf16.mxu1 %v1909_v2 }
 0x548   :  { %1675 = vmatpush3.bf16.msra.mxu1 %v1878_v17 }
 0x549   :  { %1676 = vmatprep.subr.bf16.mxu1 %v1909_v2 }
 0x54c   :  { %1677 = vmatpush3.bf16.msra.mxu1 %v1879_v18 }
 0x54d   :  { %1678 = vmatprep.subr.bf16.mxu1 %v1909_v2 }
 0x550   :  { %1679 = vmatpush3.bf16.msra.mxu1 %v1880_v19 }
 0x551   :  { %1680 = vmatprep.subr.bf16.mxu1 %v1909_v2 }
 0x554   :  { %1681 = vmatpush3.bf16.msra.mxu1 %v1881_v20 }
 0x555   :  { %1682 = vmatprep.subr.bf16.mxu1 %v1909_v2 }
 0x558   :  { %1683 = vmatpush3.bf16.msra.mxu1 %v1882_v21 }
 0x559   :  { %1684 = vmatprep.subr.bf16.mxu1 %v1909_v2 }
 0x55c   :  { %1685 = vmatpush3.bf16.msra.mxu1 %v1883_v33 }
 0x55d   :  { %1686 = vmatprep.subr.bf16.mxu1 %v1909_v2 }
 0x560   :  { %1687 = vmatpush3.bf16.msra.mxu1 %v1884_v34 }
 0x616   :  { %v1140_v22 = vpop.f32.mrb[12].mxu1 }
 0x617   :  { %v1142_v25 = vpop.f32.mrb[13].mxu1  ;;  %v1152_v28 = vadd.f32 %v1555_v23, %v1140_v22 }
 0x618   :  { %v1155_v26 = vadd.f32 %v1142_v25, %v1008_v7  ;;  %v1144_v27 = vpop.f32.mrb[14].mxu1 }
 0x619   :  { %v1153_v29 = vadd.f32 %v1556_v24, %v1144_v27  ;;  %v1146_v30 = vpop.f32.mrb[15].mxu1 }
 0x61a   :  { %v1156_v31 = vadd.f32 %v1146_v30, %v1009_v12 }
 0x61b   :  { %v1154_v32 = vpack.c.bf16 %v1153_v29, %v1152_v28 }
 0x61d   :  { %1286 = vmatmul.mubr.bf16.vlgmr.msra.gmra.mrb[16].mxu0 %v1154_v32 }
 0x6f0   :  { %v1287_v35 = vpop.f32.mrb[16].mxu0 }
 0x6f1   :  { %v1289_v38 = vpop.f32.mrb[17].mxu0  ;;  %v1299_v41 = vadd.f32 %v1573_v36, %v1287_v35 }
 0x6f2   :  { %v1302_v39 = vadd.f32 %v1289_v38, %v1155_v26  ;;  %v1291_v40 = vpop.f32.mrb[18].mxu0 }
 0x6f3   :  { %v1300_v42 = vadd.f32 %v1574_v37, %v1291_v40  ;;  %v1293_v2 = vpop.f32.mrb[19].mxu0 }
 0x6f4   :  { %v1303_v43 = vadd.f32 %v1293_v2, %v1156_v31 }
 0x6f5   :  { %v1301_v44 = vpack.c.bf16 %v1300_v42, %v1299_v41 }
 0x6f7   :  { %1689 = vmatmul.mubr.bf16.vlgmr.msra.gmra.mrb[16].mxu1 %v1301_v44 }
 0x7ca   :  { %v1402_v45 = vpop.f32.mrb[16].mxu1 }
 0x7cb   :  { %v1409_v46 = vadd.f32 %v1402_v45, %v1302_v39  ;;  %v1690_v47 = vpop.f32.mrb[17].mxu1 }
 0x7cc   :  { %v1405_v48 = vpop.f32.mrb[18].mxu1 }
 0x7cd   :  { %1411 = vst [vmem:[#allocation2] sm:$0xff] %v1409_v46  ;;  %v1410_v49 = vadd.f32 %v1405_v48, %v1303_v43  ;;  %v1691_v50 = vpop.f32.mrb[19].mxu1 }
 0x7cf   :  { %1412 = vst [vmem:[#allocation2 + $0x8] sm:$0xff] %v1410_v49 }
 0x7d0   :  { %1896 = shalt.err (!%p1893_p4)
}
 0x7d1   :  { %s1897_s24 = scalar_lea.hbm %s2460_s4, 256 }
 0x7d2   :  { %p1898_p5 = scmp.ne.s32.totalorder %s2460_s4, %s1897_s24  ;;  %p1901_p6 = scmp.lt.u32.totalorder %s1897_s24, %s2460_s4 }
 0x7d4   :  { %p1903_p7 = pnand %p1901_p6, %p1898_p5 }
 0x7d6   :  { %1906 = shalt.err (!%p1903_p7)
}
 0x7d7   :  { %s1913_s29 = smov 128   ;;  %s1914_s30 = smov 8  }
 0x7d8   :  { %1424 = dma.vmem_to_hbm [thread:$0]  %s1419_s21, 256, %s2460_s4, [#allocation3], %s1913_s29, %s1913_s29, %s1914_s30  }
 0x7d9   :  { %1907 = dma.done.wait [#allocation3], 256  }
 0x7da   :  { %1908 = vsyncadd [#allocation3], 4294967040 }
 0x7db   :  { %1428 = vsyncpa [#allocation3], 1 }

</bundles_post_ra>
